<compile_context>
chip_gen: v6e
topology: v6e:2x2x1
jax: 0.10.0
libtpu: 0.0.40
codegen_flags: <defaults>
</compile_context>

<pallas_src>
import functools
import math

import jax
import jax.numpy as jnp
from jax.experimental import pallas as pl
from jax.experimental.pallas import tpu as pltpu


# ---------------------------------------------------------------------------
# Interpolation weights (PyTorch bilinear, align_corners=False, no antialias)
# ---------------------------------------------------------------------------
def _bilinear_weights(in_size: int, out_size: int) -> jnp.ndarray:
    """Returns (out_size, in_size) row-stochastic bilinear interpolation matrix."""
    # TODO(synk): recent torchvision defaults to antialias=True for tensor
    # inputs when downscaling; this implements plain bilinear (antialias off).
    scale = in_size / out_size
    i = jnp.arange(out_size, dtype=jnp.float32)
    x = jnp.clip((i + 0.5) * scale - 0.5, 0.0, float(in_size - 1))
    x0 = jnp.floor(x)
    x1 = jnp.minimum(x0 + 1.0, float(in_size - 1))
    w1 = x - x0
    w0 = 1.0 - w1
    w = jnp.zeros((out_size, in_size), jnp.float32)
    rows = jnp.arange(out_size)
    w = w.at[rows, x0.astype(jnp.int32)].add(w0)
    w = w.at[rows, x1.astype(jnp.int32)].add(w1)
    return w


def _padded_weights(in_size: int, new_size: int, pad_before: int, size: int) -> jnp.ndarray:
    """(size, in_size) interpolation matrix with zero rows acting as the padding."""
    w = _bilinear_weights(in_size, new_size)                 # (new_size, in_size)
    wp = jnp.zeros((size, in_size), jnp.float32)
    wp = wp.at[pad_before:pad_before + new_size, :].set(w)   # zero rows == pad
    return wp


# ---------------------------------------------------------------------------
# Pallas kernel: resize + pad for a block of TB planes
# ---------------------------------------------------------------------------
def _resize_pad_kernel(x_ref, whp_ref, wwpT_ref, out_ref, *, tb: int, h: int,
                       size: int, mm_dtype):
    # x_ref:    (TB*H, W)        TB image planes stacked row-wise, source dtype
    # whp_ref:  (size, H)        padded row-interp matrix (zero rows = top/bot pad)
    # wwpT_ref: (W, size)        padded col-interp matrix^T (zero cols = l/r pad)
    # out_ref:  (TB*size, size)  2-D output slab, plane b in rows [b*size, (b+1)*size)
    x = x_ref[...].astype(mm_dtype)            # cast in-kernel (bf16 matmul operands)

    # Pass 1: flat column interpolation for all TB planes in one MXU matmul
    # (contraction over W; large M = TB*H keeps wwpT stationary in the MXU).
    # TODO(synk): when H > W a wrapper-side layout change could make this flat
    # pass contract over H instead (better MXU K fill); negligible for large
    # images so it is left as-is.
    t = jnp.dot(x, wwpT_ref[...], preferred_element_type=jnp.float32)   # (TB*H, size)
    t = t.astype(mm_dtype)

    whp = whp_ref[...]                          # (size, H), bf16
    # Pass 2: row interpolation per plane.  Each finished plane is stored
    # straight into its contiguous row range of the slab: at most one f32
    # (size, size) plane is live (no spill pressure), VMEM stores are
    # sublane/lane-dense, and the whole block goes back to HBM as a single
    # writeback DMA per grid step.
    for b in range(tb):                         # tb is small and static
        plane = jnp.dot(whp, t[b * h:(b + 1) * h, :],
                        preferred_element_type=jnp.float32)   # (size, size)
        out_ref[b * size:(b + 1) * size, :] = plane.astype(out_ref.dtype)


# ---------------------------------------------------------------------------
# Hardware / block-size heuristics
# ---------------------------------------------------------------------------
def _vmem_capacity_bytes() -> int:
    try:
        cap = getattr(pltpu.get_tpu_info(), "vmem_capacity_bytes", None)
        if cap:
            return int(cap)
    except Exception:
        pass
    return 64 * 1024 * 1024     # conservative fallback: v7x per-TensorCore VMEM


def _choose_tb(nc: int, h: int, size: int, per_plane_bytes: int,
               vmem_budget_bytes: int) -> int:
    divisors = [d for d in range(1, nc + 1) if nc % d == 0]
    # Keep the input block's (tb*H) and the output slab's (tb*size) sublane
    # dims multiples of 8 (or the full array extent).
    ok = [d for d in divisors
          if ((d * h) % 8 == 0 and (d * size) % 8 == 0) or d == nc]
    cap = max(1, min(vmem_budget_bytes // max(per_plane_bytes, 1), 32))
    for pred in (
        # fits budget, grid even (balances v7x's two TensorCores) and >= 2
        lambda d: d <= cap and (nc // d) >= 2 and (nc // d) % 2 == 0,
        lambda d: d <= cap and (nc // d) >= 2,   # fits budget, both cores get work
        lambda d: d <= cap,                      # fits budget
        lambda d: True,                          # last resort
    ):
        cands = [d for d in ok if pred(d)]
        if cands:
            return max(cands)
    return nc


# ---------------------------------------------------------------------------
# Wrapper reproducing Resize.forward
# ---------------------------------------------------------------------------
def resize_forward(image: jnp.ndarray, label: jnp.ndarray, size: int,
                   *, matmul_dtype=jnp.bfloat16):
    N, C, H, W = image.shape
    r = min(size / W, size / H)
    new_w = int(W * r)
    new_h = int(H * r)

    pad_w = 0.5 * (size - new_w)
    pad_h = 0.5 * (size - new_h)
    pad_l = int(pad_w) if (size - new_w) % 2 == 0 else math.floor(pad_w)
    pad_t = int(pad_h) if (size - new_h) % 2 == 0 else math.floor(pad_h)
    # pad_r / pad_b are implied by the zero rows/cols of the padded weights.
    # TODO(synk): the reference pads with 0; a non-zero letterbox fill would
    # need a post-add of fill * (1 - coverage).

    whp = _padded_weights(H, new_h, pad_t, size).astype(matmul_dtype)     # (size, H)
    wwpT = _padded_weights(W, new_w, pad_l, size).T.astype(matmul_dtype)  # (W, size)

    nc = N * C
    x2 = image.reshape(nc * H, W)              # contiguous reshape, source dtype

    # Output keeps the source floating dtype (halves writeback vs forced f32
    # for bf16 inputs, matches PyTorch dtype behaviour for float images).
    # TODO(synk): integer inputs (uint8) would need round-to-nearest for exact
    # PyTorch parity; they are emitted as float32 here.
    out_dtype = image.dtype if jnp.issubdtype(image.dtype, jnp.floating) else jnp.float32
    out_itemsize = jnp.dtype(out_dtype).itemsize
    mm_itemsize = jnp.dtype(matmul_dtype).itemsize

    # Generation-aware VMEM budgets: large on 128 MiB parts (v5e/v6e), modest
    # on 64 MiB v7x so the double-buffered working set stays safe.
    vmem_cap = _vmem_capacity_bytes()
    if vmem_cap >= 100 * 1024 * 1024:          # v5e / v6e (128 MiB VMEM)
        tb_budget, vmem_limit = 48 * 1024 * 1024, 96 * 1024 * 1024
    else:                                      # v7x (64 MiB per TensorCore)
        tb_budget, vmem_limit = 20 * 1024 * 1024, 32 * 1024 * 1024

    per_plane = (
        2 * H * W * image.dtype.itemsize            # double-buffered input block
        + 2 * size * size * out_itemsize            # double-buffered output block
        + mm_itemsize * (H * W + H * size)          # bf16 copies of x / pass-1 result
        + 4 * (H * size + size * size)              # f32 pass-1 accum + live plane
    )
    tb = _choose_tb(nc, H, size, per_plane, tb_budget)
    grid = (nc // tb,)

    img_out = pl.pallas_call(
        functools.partial(_resize_pad_kernel, tb=tb, h=H, size=size,
                          mm_dtype=matmul_dtype),
        out_shape=jax.ShapeDtypeStruct((nc * size, size), out_dtype),
        grid=grid,
        in_specs=[
            pl.BlockSpec((tb * H, W), lambda g: (g, 0)),   # TB planes, row-stacked
            pl.BlockSpec((size, H), lambda g: (0, 0)),     # constant weights
            pl.BlockSpec((W, size), lambda g: (0, 0)),     # constant weights
        ],
        out_specs=pl.BlockSpec((tb * size, size), lambda g: (g, 0)),
        compiler_params=pltpu.CompilerParams(
            dimension_semantics=("parallel",),
            vmem_limit_bytes=vmem_limit),
        # NOTE: pipeline_mode=pl.Buffered(3) on the image spec only if a trace
        # shows exposed input DMA; left at the default double-buffering.
    )(x2, whp, wwpT)
    img_out = img_out.reshape(N, C, size, size)

    # Label transform in plain jnp: a (m, 5) elementwise op as a kernel is all
    # launch overhead + fully masked 5-lane stores, so it stays fused in XLA.
    scale = jnp.array([1.0, r, r, r, r], jnp.float32)
    offset = jnp.array([0.0, float(pad_l), float(pad_t), 0.0, 0.0], jnp.float32)
    label_out = label.astype(jnp.float32) * scale[None, :] + offset[None, :]

    return img_out, label_out


if __name__ == "__main__":
    key = jax.random.PRNGKey(0)
    k_img, k_lbl = jax.random.split(key)

    # Small NCHW image (non-square so both resize and padding are exercised).
    N, C, H, W = 2, 4, 12, 16
    size = 24
    image = jax.random.uniform(k_img, (N, C, H, W), dtype=jnp.float32)

    # label: (m, 5) -> [class, x, y, w, h]
    m = 3
    label = jax.random.uniform(k_lbl, (m, 5), dtype=jnp.float32)

    img_out, lbl_out = resize_forward(image, label, size)
    jax.block_until_ready((img_out, lbl_out))

    assert img_out.shape == (N, C, size, size)
    assert img_out.dtype == image.dtype
    assert lbl_out.shape == (m, 5)

    # Pure-JAX f32 reference with the same separable weights (sanity check;
    # tolerance reflects the bf16 matmul operands used in the kernel).
    r = min(size / W, size / H)
    new_w, new_h = int(W * r), int(H * r)
    pad_l = int(0.5 * (size - new_w)) if (size - new_w) % 2 == 0 else math.floor(0.5 * (size - new_w))
    pad_t = int(0.5 * (size - new_h)) if (size - new_h) % 2 == 0 else math.floor(0.5 * (size - new_h))
    whp_ref = _padded_weights(H, new_h, pad_t, size)
    wwpT_ref = _padded_weights(W, new_w, pad_l, size).T
    tmp = jnp.einsum('nchw,ws->nchs', image, wwpT_ref)
    ref = jnp.einsum('oh,nchs->ncos', whp_ref, tmp)
    assert jnp.allclose(img_out, ref, atol=2e-2, rtol=2e-2), \
        float(jnp.max(jnp.abs(img_out - ref)))

    lbl_ref = (label.astype(jnp.float32) * jnp.array([1.0, r, r, r, r], jnp.float32)
               + jnp.array([0.0, float(pad_l), float(pad_t), 0.0, 0.0], jnp.float32))
    assert jnp.allclose(lbl_out, lbl_ref, atol=1e-6)

    print("KERNEL_OK")
</pallas_src>

<mosaic_0001>
module attributes {stable_mosaic.version = 11 : i64} {
  func.func @_resize_pad_kernel(%arg0: i32, %arg1: memref<48x16xf32, #tpu.memory_space<vmem>>, %arg2: memref<24x12xbf16, #tpu.memory_space<vmem>>, %arg3: memref<16x24xbf16, #tpu.memory_space<vmem>>, %arg4: memref<96x24xf32, #tpu.memory_space<vmem>>) attributes {dimension_semantics = [#tpu.dimension_semantics<parallel>], iteration_bounds = array<i64: 2>, scalar_prefetch = 0 : i64, scratch_operands = 0 : i64, tpu.core_type = #tpu.core_type<tc>, window_params = [{transform_indices = @transform_0, window_bounds = array<i64: 48, 16>}, {pipeline_mode = #tpu.pipeline_mode<synchronous>, transform_indices = @transform_1, window_bounds = array<i64: 24, 12>}, {pipeline_mode = #tpu.pipeline_mode<synchronous>, transform_indices = @transform_2, window_bounds = array<i64: 16, 24>}, {transform_indices = @transform_3, window_bounds = array<i64: 96, 24>}]} {
    %c0 = arith.constant 0 : index
    %c0_0 = arith.constant 0 : index
    %0 = vector.load %arg1[%c0, %c0_0] : memref<48x16xf32, #tpu.memory_space<vmem>>, vector<48x16xf32>
    %1 = arith.truncf %0 : vector<48x16xf32> to vector<48x16xbf16>
    %c0_1 = arith.constant 0 : index
    %c0_2 = arith.constant 0 : index
    %2 = vector.load %arg3[%c0_1, %c0_2] : memref<16x24xbf16, #tpu.memory_space<vmem>>, vector<16x24xbf16>
    %cst = arith.constant dense<0.000000e+00> : vector<48x24xf32>
    %3 = tpu.matmul %1, %2, %cst {dimension_numbers = #tpu.dot_dimension_numbers<[1], [0], [0], [1], [0, 0, 1, 1], [], []>} : vector<48x16xbf16>, vector<16x24xbf16>, vector<48x24xf32> -> vector<48x24xf32>
    %4 = arith.truncf %3 : vector<48x24xf32> to vector<48x24xbf16>
    %c0_3 = arith.constant 0 : index
    %c0_4 = arith.constant 0 : index
    %5 = vector.load %arg2[%c0_3, %c0_4] : memref<24x12xbf16, #tpu.memory_space<vmem>>, vector<24x12xbf16>
    %6 = vector.extract_strided_slice %4 {offsets = [0, 0], sizes = [12, 24], strides = [1, 1]} : vector<48x24xbf16> to vector<12x24xbf16>
    %cst_5 = arith.constant dense<0.000000e+00> : vector<24x24xf32>
    %7 = tpu.matmul %5, %6, %cst_5 {dimension_numbers = #tpu.dot_dimension_numbers<[1], [0], [0], [1], [0, 0, 1, 1], [], []>} : vector<24x12xbf16>, vector<12x24xbf16>, vector<24x24xf32> -> vector<24x24xf32>
    %c0_6 = arith.constant 0 : index
    %c0_7 = arith.constant 0 : index
    %8 = vector.load %arg4[%c0_6, %c0_7] : memref<96x24xf32, #tpu.memory_space<vmem>>, vector<24x24xf32>
    tpu.vector_store %arg4[%c0_6, %c0_7], %7 {strides = array<i32>} : memref<96x24xf32, #tpu.memory_space<vmem>>, vector<24x24xf32>,
    %9 = vector.extract_strided_slice %4 {offsets = [12, 0], sizes = [12, 24], strides = [1, 1]} : vector<48x24xbf16> to vector<12x24xbf16>
    %cst_8 = arith.constant dense<0.000000e+00> : vector<24x24xf32>
    %10 = tpu.matmul %5, %9, %cst_8 {dimension_numbers = #tpu.dot_dimension_numbers<[1], [0], [0], [1], [0, 0, 1, 1], [], []>} : vector<24x12xbf16>, vector<12x24xbf16>, vector<24x24xf32> -> vector<24x24xf32>
    %c24 = arith.constant 24 : index
    %c0_9 = arith.constant 0 : index
    %11 = vector.load %arg4[%c24, %c0_9] : memref<96x24xf32, #tpu.memory_space<vmem>>, vector<24x24xf32>
    tpu.vector_store %arg4[%c24, %c0_9], %10 {strides = array<i32>} : memref<96x24xf32, #tpu.memory_space<vmem>>, vector<24x24xf32>,
    %12 = vector.extract_strided_slice %4 {offsets = [24, 0], sizes = [12, 24], strides = [1, 1]} : vector<48x24xbf16> to vector<12x24xbf16>
    %cst_10 = arith.constant dense<0.000000e+00> : vector<24x24xf32>
    %13 = tpu.matmul %5, %12, %cst_10 {dimension_numbers = #tpu.dot_dimension_numbers<[1], [0], [0], [1], [0, 0, 1, 1], [], []>} : vector<24x12xbf16>, vector<12x24xbf16>, vector<24x24xf32> -> vector<24x24xf32>
    %c48 = arith.constant 48 : index
    %c0_11 = arith.constant 0 : index
    %14 = vector.load %arg4[%c48, %c0_11] : memref<96x24xf32, #tpu.memory_space<vmem>>, vector<24x24xf32>
    tpu.vector_store %arg4[%c48, %c0_11], %13 {strides = array<i32>} : memref<96x24xf32, #tpu.memory_space<vmem>>, vector<24x24xf32>,
    %15 = vector.extract_strided_slice %4 {offsets = [36, 0], sizes = [12, 24], strides = [1, 1]} : vector<48x24xbf16> to vector<12x24xbf16>
    %cst_12 = arith.constant dense<0.000000e+00> : vector<24x24xf32>
    %16 = tpu.matmul %5, %15, %cst_12 {dimension_numbers = #tpu.dot_dimension_numbers<[1], [0], [0], [1], [0, 0, 1, 1], [], []>} : vector<24x12xbf16>, vector<12x24xbf16>, vector<24x24xf32> -> vector<24x24xf32>
    %c72 = arith.constant 72 : index
    %c0_13 = arith.constant 0 : index
    %17 = vector.load %arg4[%c72, %c0_13] : memref<96x24xf32, #tpu.memory_space<vmem>>, vector<24x24xf32>
    tpu.vector_store %arg4[%c72, %c0_13], %16 {strides = array<i32>} : memref<96x24xf32, #tpu.memory_space<vmem>>, vector<24x24xf32>,
    return
  }
  func.func @transform_0(%arg0: i32) -> (i32, i32) {
    %c0_i32 = arith.constant 0 : i32
    %c0_i32_0 = arith.constant 0 : i32
    return %arg0, %c0_i32 : i32, i32
  }
  func.func @transform_1(%arg0: i32) -> (i32, i32) {
    %c0_i32 = arith.constant 0 : i32
    %c0_i32_0 = arith.constant 0 : i32
    %c0_i32_1 = arith.constant 0 : i32
    return %c0_i32, %c0_i32_0 : i32, i32
  }
  func.func @transform_2(%arg0: i32) -> (i32, i32) {
    %c0_i32 = arith.constant 0 : i32
    %c0_i32_0 = arith.constant 0 : i32
    %c0_i32_1 = arith.constant 0 : i32
    return %c0_i32, %c0_i32_0 : i32, i32
  }
  func.func @transform_3(%arg0: i32) -> (i32, i32) {
    %c0_i32 = arith.constant 0 : i32
    %c0_i32_0 = arith.constant 0 : i32
    return %arg0, %c0_i32 : i32, i32
  }
}

</mosaic_0001>

<bundles_post_ra>
// kernel: tpu_custom_call.1
= control target key start
LH: loop header
LB: loop body
LE: loop exit
PB: predicated region body
PF: predicated region fallthrough
CT: control target
= control target key end

     0   :  { %s690_s12 = smov 0   ;;  %s751_s0 = inlined_call_operand.vmem [shape: f32[96,16], index: 0, kind: input, shape index: {}]   ;;  %s752_s1 = inlined_call_operand.vmem [shape: bf16[24,12], index: 1, kind: input, shape index: {}]   ;;  %s753_s2 = inlined_call_operand.vmem [shape: bf16[16,24], index: 2, kind: input, shape index: {}]   ;;  %s754_s3 = inlined_call_operand.vmem [shape: f32[192,24], index: 3, kind: output, shape index: {}]  }
   0x1 LB: > { %s566_s13 = sadd.s32 4294967295, %s666_s12   ;;  %p570_p0 = scmp.ge.s32.totalorder %s666_s12, 1  ;;  %s666_s12 = sphi %s690_s12, %s13_s12  }
   0x2   : > { %p138_p1 = scmp.lt.s32.totalorder %s666_s12, 3 }
   0x4   : > { %p139_p2 = pnand %p570_p0, %p138_p1 }
   0x5   : > { %s162_s16 = smul.u32 (!%p139_p2), 6, %s566_s13 }
   0x6   : > { %142 = sbr.rel (%p139_p2) target bundleno = 439 (0x1b7), region = 32 }
   0x7   : > { %p163_p3 = scmp.lt.s32.totalorder (!%p139_p2), %s162_s16, 11  ;;  %s168_s25 = smul.u32 (!%p139_p2), 12, %s566_s13 }
   0x9   : > { %p169_p4 = scmp.lt.s32.totalorder (!%p139_p2), %s168_s25, 23 }
   0xb   : > { %v657_v0 = vld [vmem:[%s753_s2] sm:$0xff]   ;;  %v668_v1 = vmov 0.0   ;;  %vm669_vm0 = vmmov 0   ;;  %s756_s16 = smov (!%p163_p3, %s162_s16), 11  ;;  %vm192_vm1 = vcmask 130048   ;;  %vm273_vm2 = vcmask 97280  }
   0xc   : > { %605 = vmatprep.subr.bf16.mxu0 %v668_v1  ;;  %607 = vmatprep.mubr.msk.bf16.mxu0 %vm669_vm0, %v668_v1  ;;  %s571_s17 = sshll.u32 %s756_s16, 3  ;;  %v658_v11 = vld [vmem:[%s752_s1] sm:$0xff]   ;;  %vm280_vm3 = vcmask 1045504   ;;  %v659_v18 = vld [vmem:[%s752_s1 + $0x8] ss:$0 sps:$4 sm:$0xff]   ;;  %vm338_vm4 = vcmask 1041408  }
   0xd   : > { %606 = vmatpush3.bf16.msra.mxu0 %v657_v0  ;;  %s166_s20 = scalar_lea.vmem %s751_s0, %s571_s17  ;;  %621 = vmatprep.mubr.msk.bf16.mxu1 %vm273_vm2, %v658_v11  ;;  %vm397_vm5 = vcmask 1043456   ;;  %s758_s25 = smov (!%p169_p4, %s168_s25), 23  ;;  %vm332_vm6 = vcmask 195584  }
   0xe   : > { %v175_v2 = vld [vmem:[%s166_s20] sm:$0xff]  ;;  %v176_v3 = vld [vmem:[%s166_s20 + $0x8] sm:$0xff]  ;;  %v177_v5 = vld [vmem:[%s166_s20 + $0x10] sm:$0xff]  ;;  %s572_s26 = sshll.u32 %s758_s25, 3 }
   0xf   : > { %v181_v4 = vpack.c.bf16 %v176_v3, %v175_v2  ;;  %v178_v6 = vld [vmem:[%s166_s20 + $0x18] sm:$0xff]  ;;  %v179_v8 = vld [vmem:[%s166_s20 + $0x20] sm:$0xff]  ;;  %v180_v9 = vld [vmem:[%s166_s20 + $0x28] sm:$0xff]  ;;  %s172_s29 = scalar_lea.vmem %s754_s3, %s572_s26 }
  0x10   : > { %v182_v7 = vpack.c.bf16 %v178_v6, %v177_v5  ;;  %v183_v10 = vpack.c.bf16 %v180_v9, %v179_v8 }
  0x11   : > { %608 = vmatmul.mubr.msk.bf16.vlgmr.msra.gmra.mxu0 %vm192_vm1, %v181_v4 }
  0x12   : > { %611 = vmatprep.mubr.msk.bf16.mxu0 %vm669_vm0, %v668_v1 }
  0x19   : > { %612 = vmatmul.mubr.msk.bf16.gmra.mxu0 %vm192_vm1, %v182_v7 }
  0x1a   : > { %615 = vmatprep.mubr.msk.bf16.mxu0 %vm669_vm0, %v668_v1 }
  0x21   : > { %616 = vmatmul.mubr.msk.bf16.gmra.mxu0 %vm192_vm1, %v183_v10 }
  0x22   : > { %639 = vmatprep.mubr.msk.bf16.mxu0 %vm273_vm2, %v658_v11 }
  0xd1   : > { %v236_v12 = vpop.f32.mrf.mxu0 }
  0xd3   : > { %v609_v13 = vpop.f32.mrf.mxu0 }
  0xd5   : > { %v239_v14 = vpop.f32.mrf.mxu0 }
  0xd6   : > { %v259_v15 = vpack.c.bf16 %v239_v14, %v236_v12 }
  0xd7   : > { %v610_v16 = vpop.f32.mrf.mxu0 }
  0xd8   : > { %643 = vmatprep.subr.msk.bf16.mxu1 %vm280_vm3, %v259_v15  ;;  %v282_v17 = vsel %vm280_vm3, %v259_v15, 0  ;;  %v339_v24 = vrot.slane %v259_v15, 6 }
  0xd9   : > { %v244_v19 = vpop.f32.mrf.mxu0  ;;  %620 = vmatpush3.bf16.msra.mxu1 %v282_v17 }
  0xdb   : > { %v613_v20 = vpop.f32.mrf.mxu0 }
  0xdc   : > { %622 = vmatmul.mubr.msk.bf16.vlgmr.msra.gmra.mxu1 %vm273_vm2, %v659_v18 }
  0xdd   : > { %v247_v21 = vpop.f32.mrf.mxu0  ;;  %627 = vmatprep.mubr.msk.bf16.mxu1 %vm273_vm2, %v658_v11 }
  0xde   : > { %v260_v22 = vpack.c.bf16 %v247_v21, %v244_v19 }
  0xdf   : > { %v614_v23 = vpop.f32.mrf.mxu0 }
  0xe0   : > { %v340_v25 = vrot.slane %v260_v22, 6  ;;  %v398_v33 = vrot.slane %v260_v22, 4 }
  0xe1   : > { %v252_v26 = vpop.f32.mrf.mxu0 }
  0xe2   : > { %v341_v27 = vsel %vm338_vm4, %v339_v24, %v340_v25 }
  0xe3   : > { %v617_v28 = vpop.f32.mrf.mxu0  ;;  %644 = vmatprep.subr.msk.bf16.mxu1 %vm280_vm3, %v341_v27  ;;  %v343_v29 = vsel %vm280_vm3, %v341_v27, 0 }
  0xe4   : > { %626 = vmatpush3.bf16.msra.mxu1 %v343_v29 }
  0xe5   : > { %v255_v30 = vpop.f32.mrf.mxu0 }
  0xe6   : > { %v261_v31 = vpack.c.bf16 %v255_v30, %v252_v26 }
  0xe7   : > { %v618_v32 = vpop.f32.mrf.mxu0  ;;  %628 = vmatmul.mubr.msk.bf16.vlgmr.msra.gmra.mxu1 %vm273_vm2, %v659_v18 }
  0xe8   : > { %v399_v34 = vrot.slane %v261_v31, 4  ;;  %v455_v35 = vrot.slane %v261_v31, 2  ;;  %633 = vmatprep.mubr.msk.bf16.mxu1 %vm273_vm2, %v658_v11 }
  0xea   : > { %646 = vmatprep.subr.msk.bf16.mxu0 %vm280_vm3, %v455_v35  ;;  %v400_v36 = vsel %vm397_vm5, %v398_v33, %v399_v34  ;;  %v457_v37 = vsel %vm280_vm3, %v455_v35, 0 }
  0xeb   : > { %645 = vmatprep.subr.msk.bf16.mxu1 %vm280_vm3, %v400_v36  ;;  %638 = vmatpush3.bf16.msra.mxu0 %v457_v37  ;;  %v402_v38 = vsel %vm280_vm3, %v400_v36, 0 }
  0xec   : > { %632 = vmatpush3.bf16.msra.mxu1 %v402_v38 }
  0xee   : > { %640 = vmatmul.mubr.msk.bf16.vlgmr.msra.gmra.mxu0 %vm273_vm2, %v659_v18 }
  0xef   : > { %634 = vmatmul.mubr.msk.bf16.vlgmr.msra.gmra.mxu1 %vm273_vm2, %v659_v18 }
 0x19c   : > { %v623_v39 = vpop.f32.mrf.mxu1 }
 0x19d   : > { %335 = vst.msk [vmem:[%s172_s29 + $0x10] sm:$0xff] %vm332_vm6, %v623_v39 }
 0x19e   : > { %v318_v40 = vpop.f32.mrf.mxu1 }
 0x19f   : > { %333 = vst.msk [vmem:[%s172_s29] sm:$0xff] %vm332_vm6, %v318_v40 }
 0x1a0   : > { %v624_v41 = vpop.f32.mrf.mxu1 }
 0x1a2   : > { %v321_v42 = vpop.f32.mrf.mxu1 }
 0x1a3   : > { %334 = vst.msk [vmem:[%s172_s29 + $0x8] sm:$0xff] %vm332_vm6, %v321_v42 }
 0x1a7   : > { %v629_v43 = vpop.f32.mrf.mxu1 }
 0x1a8   : > { %395 = vst.msk [vmem:[%s172_s29 + $0x28] sm:$0xff] %vm332_vm6, %v629_v43 }
 0x1a9   : > { %v379_v44 = vpop.f32.mrf.mxu1 }
 0x1aa   : > { %393 = vst.msk [vmem:[%s172_s29 + $0x18] sm:$0xff] %vm332_vm6, %v379_v44 }
 0x1ab   : > { %v630_v45 = vpop.f32.mrf.mxu1 }
 0x1ad   : > { %v382_v46 = vpop.f32.mrf.mxu1 }
 0x1ae   : > { %394 = vst.msk [vmem:[%s172_s29 + $0x20] sm:$0xff] %vm332_vm6, %v382_v46  ;;  %v641_v47 = vpop.f32.mrf.mxu0 }
 0x1af   : > { %v635_v48 = vpop.f32.mrf.mxu1  ;;  %509 = vst.msk [vmem:[%s172_s29 + $0x58] sm:$0xff] %vm332_vm6, %v641_v47 }
 0x1b0   : > { %454 = vst.msk [vmem:[%s172_s29 + $0x40] sm:$0xff] %vm332_vm6, %v635_v48  ;;  %v493_v49 = vpop.f32.mrf.mxu0 }
 0x1b1   : > { %v438_v50 = vpop.f32.mrf.mxu1  ;;  %507 = vst.msk [vmem:[%s172_s29 + $0x48] sm:$0xff] %vm332_vm6, %v493_v49 }
 0x1b2   : > { %452 = vst.msk [vmem:[%s172_s29 + $0x30] sm:$0xff] %vm332_vm6, %v438_v50  ;;  %v642_v51 = vpop.f32.mrf.mxu0 }
 0x1b3   : > { %v636_v52 = vpop.f32.mrf.mxu1 }
 0x1b4   : > { %v496_v53 = vpop.f32.mrf.mxu0 }
 0x1b5   : > { %v441_v54 = vpop.f32.mrf.mxu1  ;;  %508 = vst.msk [vmem:[%s172_s29 + $0x50] sm:$0xff] %vm332_vm6, %v496_v53 }
 0x1b6   : > { %453 = vst.msk [vmem:[%s172_s29 + $0x38] sm:$0xff] %vm332_vm6, %v441_v54 }
 0x1b7 PF: > { %s13_s12 = sadd.s32 1, %s666_s12  }
 0x1b8   : > { %p10_p5 = scmp.ge.s32.totalorder %s13_s12, 4  }
 0x1ba   :  { %12 = sbr.rel (!%p10_p5) target bundleno = 1 (0x1), region = 62 }

</bundles_post_ra>
